<compile_context>
chip_gen: v6e
topology: v6e:2x2x1
jax: 0.10.0
libtpu: 0.0.40
codegen_flags: <defaults>
</compile_context>

<pallas_src>
import jax
import jax.numpy as jnp
from jax import lax
from jax.experimental import pallas as pl
from jax.experimental.pallas import tpu as pltpu


def _vq_kernel(xt_ref, p_ref, p2_ref, onehot_ref, closest_ref):
    """Per-tile VQ in transposed (lane-dense) layout.

    xt_ref:      (C, tm) f32 -- tile of flattened inputs, rows on the lane axis
    p_ref:       (K, C)  f32 -- full prototype table (resident every step)
    p2_ref:      (K, 1)  f32 -- precomputed ||p||^2 per prototype
    onehot_ref:  (K, tm) f32
    closest_ref: (C, tm) f32
    """
    xt = xt_ref[...]                                                # (C, tm)
    p = p_ref[...]                                                  # (K, C)
    p2 = p2_ref[...]                                                # (K, 1)

    # argmax_k ||x - p_k|| == argmax_k (||p_k||^2 - 2 x.p_k):
    # sqrt is monotone and ||x||^2 is constant across k, so both are dropped.
    xp = jnp.dot(p, xt, preferred_element_type=jnp.float32)        # (K, tm) MXU
    score = p2 - 2.0 * xp                                           # (K, tm)

    k = score.shape[0]
    maxv = jnp.max(score, axis=0, keepdims=True)                    # (1, tm)
    k_iota = lax.broadcasted_iota(jnp.int32, score.shape, 0)        # (K, tm)
    # first-occurrence tie-break along K, matching torch/jnp argmax
    cand = jnp.where(score == maxv, k_iota, k)
    code = jnp.min(cand, axis=0, keepdims=True)                     # (1, tm)

    one_hot = (k_iota == code).astype(jnp.float32)                  # (K, tm)
    onehot_ref[...] = one_hot
    # prototypes[code] as p^T @ one_hot (MXU gather), already in (C, tm) layout.
    closest_ref[...] = jnp.dot(p.T, one_hot,
                               preferred_element_type=jnp.float32)  # (C, tm)


def vq_forward(x_nchw, prototypes, *, tm=2048):
    """JAX wrapper: deshape -> Pallas kernel over lane-dense row tiles -> reshape."""
    N, C, H, W = x_nchw.shape
    K = prototypes.shape[0]
    M = N * H * W

    # Row tile: multiple of 128, no larger than M rounded up to 128
    # (so the demo's M = 512 is a single grid step).
    tm = max(128, (min(int(tm), pl.cdiv(M, 128) * 128) // 128) * 128)
    Mp = pl.cdiv(M, tm) * tm

    # deshape (transposed): NCHW -> (C, M), rows on the lane axis.
    x_cm = jnp.transpose(x_nchw, (1, 0, 2, 3)).reshape(C, M).astype(jnp.float32)
    if Mp != M:
        x_cm = jnp.pad(x_cm, ((0, 0), (0, Mp - M)))

    protos = prototypes.astype(jnp.float32)                         # (K, C)
    p2 = jnp.sum(protos * protos, axis=-1, keepdims=True)           # (K, 1), hoisted

    # Explicit VMEM budget: double-buffered tiles + resident prototype block,
    # clamped so it is valid on v5e/v6e (128 MiB) and v7x (64 MiB) alike.
    per_step_bytes = 4 * tm * (2 * C + K)        # x tile + both output tiles
    resident_bytes = 4 * (K * C + K)             # prototypes + ||p||^2
    vmem_limit = 2 * per_step_bytes + 2 * resident_bytes + (2 << 20)
    vmem_limit = int(min(max(vmem_limit, 4 << 20), 32 << 20))

    one_hot_km, closest_cm = pl.pallas_call(
        _vq_kernel,
        out_shape=(
            jax.ShapeDtypeStruct((K, Mp), jnp.float32),
            jax.ShapeDtypeStruct((C, Mp), jnp.float32),
        ),
        grid_spec=pltpu.PrefetchScalarGridSpec(
            num_scalar_prefetch=0,
            grid=(Mp // tm,),
            in_specs=[
                pl.BlockSpec((C, tm), lambda i: (0, i)),   # input rows (lane-dense)
                pl.BlockSpec((K, C), lambda i: (0, 0)),    # prototypes, full
                pl.BlockSpec((K, 1), lambda i: (0, 0)),    # ||p||^2, full
            ],
            out_specs=[
                pl.BlockSpec((K, tm), lambda i: (0, i)),
                pl.BlockSpec((C, tm), lambda i: (0, i)),
            ],
        ),
        compiler_params=pltpu.CompilerParams(
            dimension_semantics=("parallel",),
            vmem_limit_bytes=vmem_limit,
        ),
    )(x_cm, protos, p2)

    # drop row padding, reshape back to NCHW-style outputs
    one_hot_km = one_hot_km[:, :M]
    closest_cm = closest_cm[:, :M]
    one_hot = jnp.transpose(one_hot_km.reshape(K, N, H, W), (1, 0, 2, 3))
    closest = jnp.transpose(closest_cm.reshape(C, N, H, W), (1, 0, 2, 3))
    return one_hot, closest


if __name__ == "__main__":
    # Deterministic parameter / input construction (mirrors VQ.__init__).
    in_size, n_vectors = 4, 8
    N, H, W = 2, 16, 16

    key = jax.random.PRNGKey(0)
    kx, kc = jax.random.split(key)

    x = jax.random.normal(kx, (N, in_size, H, W), dtype=jnp.float32)
    combinations = jax.random.normal(kc, (n_vectors, in_size), dtype=jnp.float32)
    weights = jnp.ones((in_size,), dtype=jnp.float32)
    prototypes = combinations / weights           # == combinations at init

    # TODO(synk): EMA state update (self.update) mutates module state only and
    # does not affect this call's outputs; straight-through gradient
    # (replace_gradient) is a backward-pass custom_vjp, not implemented here.

    one_hot, closest = vq_forward(x, prototypes)
    jax.block_until_ready((one_hot, closest))

    assert one_hot.shape == (N, n_vectors, H, W)
    assert closest.shape == (N, in_size, H, W)
    # each spatial location should be assigned exactly one symbol
    assert bool(jnp.all(jnp.sum(one_hot, axis=1) == 1.0))

    # pure-JAX reference check (module semantics: argmax over the L2 distance)
    x_flat = jnp.transpose(x, (0, 2, 3, 1)).reshape(-1, in_size)
    dist_ref = jnp.linalg.norm(
        x_flat[:, None, :] - prototypes[None, :, :], axis=-1)
    code_ref = jnp.argmax(dist_ref, axis=1)
    onehot_ref = jax.nn.one_hot(code_ref, n_vectors, dtype=jnp.float32)
    closest_ref = prototypes[code_ref]
    onehot_ref = jnp.transpose(
        onehot_ref.reshape(N, H, W, n_vectors), (0, 3, 1, 2))
    closest_ref = jnp.transpose(
        closest_ref.reshape(N, H, W, in_size), (0, 3, 1, 2))
    assert bool(jnp.array_equal(one_hot, onehot_ref))
    assert bool(jnp.allclose(closest, closest_ref, atol=1e-5, rtol=1e-5))

    print("KERNEL_OK")
</pallas_src>

<mosaic_0001>
module attributes {stable_mosaic.version = 11 : i64} {
  func.func @_vq_kernel(%arg0: i32, %arg1: memref<4x512xf32, #tpu.memory_space<vmem>>, %arg2: memref<8x4xf32, #tpu.memory_space<vmem>>, %arg3: memref<8x1xf32, #tpu.memory_space<vmem>>, %arg4: memref<8x512xf32, #tpu.memory_space<vmem>>, %arg5: memref<4x512xf32, #tpu.memory_space<vmem>>) attributes {dimension_semantics = [#tpu.dimension_semantics<parallel>], iteration_bounds = array<i64: 1>, scalar_prefetch = 0 : i64, scratch_operands = 0 : i64, tpu.core_type = #tpu.core_type<tc>, window_params = [{transform_indices = @transform_0, window_bounds = array<i64: 4, 512>}, {pipeline_mode = #tpu.pipeline_mode<synchronous>, transform_indices = @transform_1, window_bounds = array<i64: 8, 4>}, {pipeline_mode = #tpu.pipeline_mode<synchronous>, transform_indices = @transform_2, window_bounds = array<i64: 8, 1>}, {transform_indices = @transform_3, window_bounds = array<i64: 8, 512>}, {transform_indices = @transform_4, window_bounds = array<i64: 4, 512>}]} {
    %c0 = arith.constant 0 : index
    %c0_0 = arith.constant 0 : index
    %0 = vector.load %arg1[%c0, %c0_0] : memref<4x512xf32, #tpu.memory_space<vmem>>, vector<4x512xf32>
    %c0_1 = arith.constant 0 : index
    %c0_2 = arith.constant 0 : index
    %1 = vector.load %arg2[%c0_1, %c0_2] : memref<8x4xf32, #tpu.memory_space<vmem>>, vector<8x4xf32>
    %c0_3 = arith.constant 0 : index
    %c0_4 = arith.constant 0 : index
    %2 = vector.load %arg3[%c0_3, %c0_4] : memref<8x1xf32, #tpu.memory_space<vmem>>, vector<8x1xf32>
    %cst = arith.constant dense<0.000000e+00> : vector<8x512xf32>
    %3 = tpu.matmul %1, %0, %cst {dimension_numbers = #tpu.dot_dimension_numbers<[1], [0], [0], [1], [0, 0, 1, 1], [], []>} : vector<8x4xf32>, vector<4x512xf32>, vector<8x512xf32> -> vector<8x512xf32>
    %cst_5 = arith.constant 2.000000e+00 : f32
    %4 = vector.broadcast %cst_5 : f32 to vector<8x512xf32>
    %5 = arith.mulf %4, %3 : vector<8x512xf32>
    %6 = vector.broadcast %2 : vector<8x1xf32> to vector<8x512xf32>
    %7 = arith.subf %6, %5 : vector<8x512xf32>
    %cst_6 = arith.constant dense<0xFF800000> : vector<512xf32>
    %8 = vector.multi_reduction <maximumf>, %7, %cst_6 [0] : vector<8x512xf32> to vector<512xf32>
    %9 = vector.shape_cast %8 : vector<512xf32> to vector<1x512xf32>
    %10 = tpu.iota {dimensions = array<i32: 0>} : vector<8x512xi32>
    %11 = vector.broadcast %9 : vector<1x512xf32> to vector<8x512xf32>
    %12 = arith.cmpf oeq, %7, %11 : vector<8x512xf32>
    %c8_i32 = arith.constant 8 : i32
    %13 = vector.broadcast %c8_i32 : i32 to vector<8x512xi32>
    %14 = arith.select %12, %10, %13 : vector<8x512xi1>, vector<8x512xi32>
    %cst_7 = arith.constant dense<2147483647> : vector<512xi32>
    %15 = vector.multi_reduction <minsi>, %14, %cst_7 [0] : vector<8x512xi32> to vector<512xi32>
    %16 = vector.shape_cast %15 : vector<512xi32> to vector<1x512xi32>
    %17 = vector.broadcast %16 : vector<1x512xi32> to vector<8x512xi32>
    %18 = arith.cmpi eq, %10, %17 : vector<8x512xi32>
    %19 = arith.extui %18 : vector<8x512xi1> to vector<8x512xi32>
    %20 = arith.sitofp %19 : vector<8x512xi32> to vector<8x512xf32>
    %c0_8 = arith.constant 0 : index
    %c0_9 = arith.constant 0 : index
    %21 = vector.load %arg4[%c0_8, %c0_9] : memref<8x512xf32, #tpu.memory_space<vmem>>, vector<8x512xf32>
    tpu.vector_store %arg4[%c0_8, %c0_9], %20 {strides = array<i32>} : memref<8x512xf32, #tpu.memory_space<vmem>>, vector<8x512xf32>,
    %22 = tpu.transpose %1, [1, 0] : vector<8x4xf32> -> vector<4x8xf32>
    %cst_10 = arith.constant dense<0.000000e+00> : vector<4x512xf32>
    %23 = tpu.matmul %22, %20, %cst_10 {dimension_numbers = #tpu.dot_dimension_numbers<[1], [0], [0], [1], [0, 0, 1, 1], [], []>} : vector<4x8xf32>, vector<8x512xf32>, vector<4x512xf32> -> vector<4x512xf32>
    %c0_11 = arith.constant 0 : index
    %c0_12 = arith.constant 0 : index
    %24 = vector.load %arg5[%c0_11, %c0_12] : memref<4x512xf32, #tpu.memory_space<vmem>>, vector<4x512xf32>
    tpu.vector_store %arg5[%c0_11, %c0_12], %23 {strides = array<i32>} : memref<4x512xf32, #tpu.memory_space<vmem>>, vector<4x512xf32>,
    return
  }
  func.func @transform_0(%arg0: i32) -> (i32, i32) {
    %c0_i32 = arith.constant 0 : i32
    %c0_i32_0 = arith.constant 0 : i32
    return %c0_i32, %arg0 : i32, i32
  }
  func.func @transform_1(%arg0: i32) -> (i32, i32) {
    %c0_i32 = arith.constant 0 : i32
    %c0_i32_0 = arith.constant 0 : i32
    %c0_i32_1 = arith.constant 0 : i32
    return %c0_i32, %c0_i32_0 : i32, i32
  }
  func.func @transform_2(%arg0: i32) -> (i32, i32) {
    %c0_i32 = arith.constant 0 : i32
    %c0_i32_0 = arith.constant 0 : i32
    %c0_i32_1 = arith.constant 0 : i32
    return %c0_i32, %c0_i32_0 : i32, i32
  }
  func.func @transform_3(%arg0: i32) -> (i32, i32) {
    %c0_i32 = arith.constant 0 : i32
    %c0_i32_0 = arith.constant 0 : i32
    return %c0_i32, %arg0 : i32, i32
  }
  func.func @transform_4(%arg0: i32) -> (i32, i32) {
    %c0_i32 = arith.constant 0 : i32
    %c0_i32_0 = arith.constant 0 : i32
    return %c0_i32, %arg0 : i32, i32
  }
}

</mosaic_0001>

<bundles_post_ra>
// kernel: tpu_custom_call.1
= control target key start
LH: loop header
LB: loop body
LE: loop exit
PB: predicated region body
PF: predicated region fallthrough
CT: control target
= control target key end

     0   :  { %10 = vsyncpa [#allocation3], 0  ;;  %vm30_vm0 = vcmask 1043456   ;;  %v564_v4 = vmov 0.0   ;;  %s642_s0 = inlined_call_operand.vmem [shape: f32[4,512], index: 0, kind: input, shape index: {}]   ;;  %s643_s1 = inlined_call_operand.vmem [shape: f32[8,4], index: 1, kind: input, shape index: {}]   ;;  %s644_s2 = inlined_call_operand.vmem [shape: f32[8,1], index: 2, kind: input, shape index: {}]   ;;  %s645_s3 = inlined_call_operand.hbm [shape: f32[8,512], index: 3, kind: output, shape index: {0}]   ;;  %s646_s4 = inlined_call_operand.hbm [shape: f32[4,512], index: 4, kind: output, shape index: {1}]  }
   0x1   :  { %v18_v0 = vld [vmem:[%s642_s0] sm:$0xff]  ;;  %v19_v1 = vld [vmem:[%s642_s0 + $0x8] sm:$0xff]  ;;  %103 = vmatprep.mubr.f32.mxu0 %v564_v4  ;;  %174 = vmatprep.mubr.f32.mxu1 %v564_v4 }
   0x2   :  { %v24_v2 = vcombine.high %v18_v0, %v18_v0  ;;  %v25_v3 = vcombine.high %v19_v1, %v19_v1 }
   0x3   :  { %11 = vsyncpa [#allocation5], 0  ;;  %v20_v5 = vld [vmem:[%s643_s1] sm:$0xff]  ;;  %vm26_vm1 = vcmask 31744   ;;  %v565_v6 = vmov 0   ;;  %v218_v31 = vlaneseq  ;;  %s567_s1 = smov [#allocation2]  }
   0x4   :  { %517 = vset.pattern.permute.xlu0 %v565_v6  ;;  %496 = vmatprep.subr.msk.mxu0 %vm30_vm0, %v24_v2  ;;  %v21_v7 = vld [vmem:[%s644_s2] sm:$0xff]  ;;  %s474_s2 = sshll.u32 %s567_s1, 4  ;;  %s475_s2 = int_to_ptr.vmem [resolvable:$true] %s474_s2 }
   0x5   :  { %499 = vmatprep.subr.msk.mxu1 %vm30_vm0, %v25_v3  ;;  %497 = vmatpush1.msk.msra.mxu0 %vm30_vm0, %v18_v0  ;;  %v614_v40 = vshrl.u32 %v218_v31, 7  ;;  %s520_s22 = scalar_lea.vmem %s475_s2, 512  ;;  %p525_p1 = scmp.lt.s32.totalorder %s475_s2, %s475_s2 }
   0x6   :  { %500 = vmatpush1.msk.msra.mxu1 %vm30_vm0, %v19_v1  ;;  %498 = vmatmul.mubr.msk.f32.vlgmr.msra.gmra.mxu0 %vm26_vm1, %v20_v5  ;;  %p521_p0 = scmp.ne.s32.totalorder %s475_s2, %s520_s22  ;;  %p526_p2 = scmp.lt.s32.totalorder %s520_s22, %s520_s22 }
   0x7   :  { %501 = vmatmul.mubr.msk.f32.vlgmr.msra.gmra.mxu1 %vm26_vm1, %v20_v5  ;;  %187 = vperm.xlu0 %517, %v21_v7  }
   0x8   :  { %380 = vmatprep.mubr.f32.mxu0 %v564_v4  ;;  %451 = vmatprep.mubr.f32.mxu1 %v564_v4  ;;  %p527_p3 = por %p526_p2, %p525_p1 }
   0xa   :  { %p528_p4 = pnand %p527_p3, %p521_p0 }
  0x25   :  { %280 = vxpose.xlu0.b32.start.end [1/1] (short) (narrow) %v20_v5, 8 }
  0x82   :  { %v188_v8 = vpop.permute.xlu0 %187 }
  0xc6   :  { %v105_v9 = vpop.f32.mrf.mxu0 }
  0xc7   :  { %v176_v10 = vpop.f32.mrf.mxu1  ;;  %v181_v11 = vmul.f32 2.0, %v105_v9 }
  0xc8   :  { %v183_v12 = vmul.f32 2.0, %v176_v10  ;;  %v107_v13 = vpop.f32.mrf.mxu0 }
  0xc9   :  { %v178_v14 = vpop.f32.mrf.mxu1  ;;  %v190_v15 = vsub.f32 %v188_v8, %v181_v11  ;;  %v182_v17 = vmul.f32 2.0, %v107_v13 }
  0xca   :  { %v192_v16 = vsub.f32 %v188_v8, %v183_v12  ;;  %v184_v18 = vmul.f32 2.0, %v178_v14  ;;  %v296_v14 = vpop.trf.xlu0 }
  0xcb   :  { %v194_v19 = vrot.slane %v190_v15, 4  ;;  %v191_v21 = vsub.f32 %v188_v8, %v182_v17 }
  0xcc   :  { %v206_v20 = vrot.slane %v192_v16, 4  ;;  %v193_v22 = vsub.f32 %v188_v8, %v184_v18 }
  0xcd   :  { %v195_v23 = vmax.f32 %v190_v15, %v194_v19  ;;  %v200_v25 = vrot.slane %v191_v21, 4 }
  0xce   :  { %v207_v24 = vmax.f32 %v192_v16, %v206_v20  ;;  %v212_v26 = vrot.slane %v193_v22, 4 }
  0xcf   :  { %v196_v27 = vrot.slane %v195_v23, 2  ;;  %v201_v29 = vmax.f32 %v191_v21, %v200_v25 }
  0xd0   :  { %v208_v28 = vrot.slane %v207_v24, 2  ;;  %v213_v30 = vmax.f32 %v193_v22, %v212_v26 }
  0xd1   :  { %v197_v32 = vmax.f32 %v195_v23, %v196_v27  ;;  %v202_v34 = vrot.slane %v201_v29, 2 }
  0xd2   :  { %v209_v33 = vmax.f32 %v207_v24, %v208_v28  ;;  %v214_v35 = vrot.slane %v213_v30, 2 }
  0xd3   :  { %v198_v36 = vrot.slane %v197_v32, 1  ;;  %v203_v38 = vmax.f32 %v201_v29, %v202_v34 }
  0xd4   :  { %v210_v37 = vrot.slane %v209_v33, 1  ;;  %v215_v39 = vmax.f32 %v213_v30, %v214_v35 }
  0xd5   :  { %v199_v41 = vmax.f32 %v197_v32, %v198_v36  ;;  %v204_v43 = vrot.slane %v203_v38, 1 }
  0xd6   :  { %v211_v42 = vmax.f32 %v209_v33, %v210_v37  ;;  %v216_v44 = vrot.slane %v215_v39, 1 }
  0xd7   :  { %vm220_vm2 = vcmp.eq.f32.partialorder %v190_v15, %v199_v41  ;;  %v205_v45 = vmax.f32 %v203_v38, %v204_v43 }
  0xd8   :  { %vm222_vm3 = vcmp.eq.f32.partialorder %v192_v16, %v211_v42  ;;  %v217_v46 = vmax.f32 %v215_v39, %v216_v44  ;;  %v224_v47 = vsel %vm220_vm2, %v614_v40, 8  ;;  %v566_v16 = vmov 1.0  }
  0xd9   :  { %v226_v48 = vsel %vm222_vm3, %v614_v40, 8  ;;  %v228_v49 = vrot.slane %v224_v47, 4  ;;  %vm221_vm4 = vcmp.eq.f32.partialorder %v191_v21, %v205_v45 }
  0xda   :  { %v246_v50 = vrot.slane %v226_v48, 4  ;;  %vm223_vm5 = vcmp.eq.f32.partialorder %v193_v22, %v217_v46  ;;  %v225_v51 = vsel %vm221_vm4, %v614_v40, 8 }
  0xdb   :  { %v227_v52 = vsel %vm223_vm5, %v614_v40, 8  ;;  %v237_v53 = vrot.slane %v225_v51, 4  ;;  %vm229_vm6 = vcmp.lt.s32.totalorder %v224_v47, %v228_v49 }
  0xdc   :  { %v255_v54 = vrot.slane %v227_v52, 4  ;;  %vm247_vm7 = vcmp.lt.s32.totalorder %v226_v48, %v246_v50  ;;  %v230_v55 = vsel %vm229_vm6, %v224_v47, %v228_v49  ;;  %vm312_vm6 = vcmask 64512  }
  0xdd   :  { %v248_v56 = vsel %vm247_vm7, %v226_v48, %v246_v50  ;;  %vm238_vm8 = vcmp.lt.s32.totalorder %v225_v51, %v237_v53  ;;  %v231_v57 = vrot.slane %v230_v55, 2 }
  0xde   :  { %vm256_vm9 = vcmp.lt.s32.totalorder %v227_v52, %v255_v54  ;;  %v249_v58 = vrot.slane %v248_v56, 2  ;;  %v239_v59 = vsel %vm238_vm8, %v225_v51, %v237_v53 }
  0xdf   :  { %v257_v60 = vsel %vm256_vm9, %v227_v52, %v255_v54  ;;  %v240_v61 = vrot.slane %v239_v59, 2  ;;  %vm232_vm10 = vcmp.lt.s32.totalorder %v230_v55, %v231_v57 }
  0xe0   :  { %v258_v62 = vrot.slane %v257_v60, 2  ;;  %vm250_vm11 = vcmp.lt.s32.totalorder %v248_v56, %v249_v58  ;;  %v233_v63 = vsel %vm232_vm10, %v230_v55, %v231_v57 }
  0xe1   :  { %v251_v0 = vsel %vm250_vm11, %v248_v56, %v249_v58  ;;  %vm241_vm12 = vcmp.lt.s32.totalorder %v239_v59, %v240_v61  ;;  %v234_v1 = vrot.slane %v233_v63, 1 }
  0xe2   :  { %vm259_vm13 = vcmp.lt.s32.totalorder %v257_v60, %v258_v62  ;;  %v252_v2 = vrot.slane %v251_v0, 1  ;;  %v242_v3 = vsel %vm241_vm12, %v239_v59, %v240_v61 }
  0xe3   :  { %v260_v5 = vsel %vm259_vm13, %v257_v60, %v258_v62  ;;  %v243_v6 = vrot.slane %v242_v3, 1  ;;  %vm235_vm14 = vcmp.lt.s32.totalorder %v233_v63, %v234_v1 }
  0xe4   :  { %v261_v7 = vrot.slane %v260_v5, 1  ;;  %vm253_vm15 = vcmp.lt.s32.totalorder %v251_v0, %v252_v2  ;;  %v236_v8 = vsel %vm235_vm14, %v233_v63, %v234_v1 }
  0xe5   :  { %v254_v9 = vsel %vm253_vm15, %v251_v0, %v252_v2  ;;  %vm244_vm0 = vcmp.lt.s32.totalorder %v242_v3, %v243_v6  ;;  %vm264_vm2 = vcmp.eq.s32.totalorder %v614_v40, %v236_v8 }
  0xe6   :  { %vm262_vm1 = vcmp.lt.s32.totalorder %v260_v5, %v261_v7  ;;  %vm266_vm3 = vcmp.eq.s32.totalorder %v614_v40, %v254_v9  ;;  %v245_v10 = vsel %vm244_vm0, %v242_v3, %v243_v6  ;;  %v502_v12 = vsel %vm264_vm2, 1.0, %v564_v4 }
  0xe7   :  { %v263_v11 = vsel %vm262_vm1, %v260_v5, %v261_v7  ;;  %v504_v13 = vsel %vm266_vm3, 1.0, %v564_v4  ;;  %vm265_vm4 = vcmp.eq.s32.totalorder %v614_v40, %v245_v10  ;;  %276 = vst [vmem:[#allocation2] sm:$0xff] %v502_v12 }
  0xe8   :  { %vm267_vm5 = vcmp.eq.s32.totalorder %v614_v40, %v263_v11  ;;  %278 = vst [vmem:[#allocation2 + $0x10] sm:$0xff] %v504_v13  ;;  %v503_v15 = vsel %vm265_vm4, 1.0, %v564_v4  ;;  %506 = vmatprep.subr.msk.mxu0 %vm265_vm4, %v566_v16 }
  0xe9   :  { %v505_v17 = vsel %vm267_vm5, 1.0, %v564_v4  ;;  %509 = vmatprep.subr.msk.mxu1 %vm267_vm5, %v566_v16  ;;  %277 = vst [vmem:[#allocation2 + $0x8] sm:$0xff] %v503_v15  ;;  %507 = vmatpush1.msk.msra.mxu0 %vm264_vm2, %v566_v16 }
  0xea   :  { %279 = vst [vmem:[#allocation2 + $0x18] sm:$0xff] %v505_v17  ;;  %510 = vmatpush1.msk.msra.mxu1 %vm266_vm3, %v566_v16  ;;  %508 = vmatmul.mubr.msk.f32.vlgmr.msra.gmra.mxu0 %vm312_vm6, %v296_v14 }
  0xeb   :  { %511 = vmatmul.mubr.msk.f32.vlgmr.msra.gmra.mxu1 %vm312_vm6, %v296_v14 }
  0xec   :  { %531 = shalt.err (!%p528_p4)
}
  0xed   :  { %477 = dma.vmem_to_hbm [thread:$0]  %s475_s2, 512, %s645_s3, [#allocation3]  }
  0xee   :  { %s568_s25 = smov [#allocation4]  }
  0xef   :  { %s484_s26 = sshll.u32 %s568_s25, 4  ;;  %s485_s26 = int_to_ptr.vmem [resolvable:$true] %s484_s26 }
  0xf0   :  { %s540_s27 = scalar_lea.vmem %s485_s26, 256  ;;  %p545_p6 = scmp.lt.s32.totalorder %s485_s26, %s485_s26 }
  0xf1   :  { %p541_p5 = scmp.ne.s32.totalorder %s485_s26, %s540_s27  ;;  %p546_p7 = scmp.lt.s32.totalorder %s540_s27, %s540_s27 }
  0xf3   :  { %p547_p8 = por %p546_p7, %p545_p6 }
  0xf5   :  { %p548_p9 = pnand %p547_p8, %p541_p5 }
 0x1aa   :  { %v382_v4 = vpop.f32.mrf.mxu0 }
 0x1ab   :  { %v453_v18 = vpop.f32.mrf.mxu1 }
 0x1ac   :  { %v384_v19 = vpop.f32.mrf.mxu0 }
 0x1ad   :  { %v455_v20 = vpop.f32.mrf.mxu1  ;;  %v462_v21 = vcombine.low %v382_v4, %v384_v19 }
 0x1ae   :  { %v463_v22 = vcombine.low %v453_v18, %v455_v20 }
 0x1af   :  { %466 = vst [vmem:[#allocation4] sm:$0xff] %v462_v21 }
 0x1b0   :  { %467 = vst [vmem:[#allocation4 + $0x8] sm:$0xff] %v463_v22 }
 0x1b1   :  { %551 = shalt.err (!%p548_p9)
}
 0x1b2   :  { %487 = dma.vmem_to_hbm [thread:$0]  %s485_s26, 256, %s646_s4, [#allocation5]  }
 0x1b3   :  { %560 = dma.done.wait [#allocation3], 512  }
 0x1b4   :  { %561 = vsyncadd [#allocation3], 4294966784 }
 0x1b5   :  { %562 = dma.done.wait [#allocation5], 256  }
 0x1b6   :  { %563 = vsyncadd [#allocation5], 4294967040 }
 0x1b7   :  { %494 = vsyncpa [#allocation3], 1 }
 0x1b8   :  { %495 = vsyncpa [#allocation5], 1 }

</bundles_post_ra>
